<compile_context>
chip_gen: v7x
topology: tpu7x:2x2x1
jax: 0.10.0
libtpu: 0.0.40
codegen_flags: <defaults>
</compile_context>

<pallas_src>
import functools

import jax
import jax.numpy as jnp
from jax.experimental import pallas as pl
from jax.experimental.pallas import tpu as pltpu


D_IN = 728        # as in the PyTorch module (likely a 784 typo, kept as spec'd)
D_H1 = 256
D_H2 = 128
D_OUT = 10
N_PAD = 128       # 10 padded up to a full lane tile (one-time, in the weights)

_COMPUTE_DTYPE = jnp.bfloat16


def _round_up(x, m):
    return ((x + m - 1) // m) * m


def _mlp_kernel(x_ref, w1_ref, b1_ref, w2_ref, b2_ref, w3_ref, b3_ref, out_ref):
    # Layer 1 + ReLU.  bf16 operands -> MXU, f32 accumulation / epilogue.
    x = x_ref[...].astype(_COMPUTE_DTYPE)                     # no-op if x is bf16
    h1 = jnp.dot(x, w1_ref[...], preferred_element_type=jnp.float32)
    h1 = jnp.maximum(h1 + b1_ref[...], 0.0)

    # Layer 2 + ReLU.
    h2 = jnp.dot(h1.astype(_COMPUTE_DTYPE), w2_ref[...],
                 preferred_element_type=jnp.float32)
    h2 = jnp.maximum(h2 + b2_ref[...], 0.0)

    # Output layer (padded to 128 lanes; pad bias = -1e30, f32 throughout).
    z = jnp.dot(h2.astype(_COMPUTE_DTYPE), w3_ref[...],
                preferred_element_type=jnp.float32) + b3_ref[...]

    # Numerically-stable log-softmax over the last axis (all f32).  Padded
    # columns have z = -1e30, so exp(shifted) underflows to exactly 0 and
    # they never win the max -> numerics identical to the 10-wide softmax.
    z_max = jnp.max(z, axis=-1, keepdims=True)
    shifted = z - z_max
    lse = jnp.log(jnp.sum(jnp.exp(shifted), axis=-1, keepdims=True))
    out_ref[...] = (shifted - lse).astype(out_ref.dtype)


def prepare_params(params):
    """One-time param prep: pad the output layer to 128 lanes, cast weights
    to bf16 (MXU operands), keep biases in f32 (f32 epilogue)."""
    w1 = params["w1"].astype(_COMPUTE_DTYPE)                       # (728, 256)
    w2 = params["w2"].astype(_COMPUTE_DTYPE)                       # (256, 128)
    w3 = jnp.pad(params["w3"],
                 ((0, 0), (0, N_PAD - D_OUT))).astype(_COMPUTE_DTYPE)   # (128, 128)
    b1 = params["b1"].astype(jnp.float32)                          # (1, 256)
    b2 = params["b2"].astype(jnp.float32)                          # (1, 128)
    b3 = jnp.pad(params["b3"].astype(jnp.float32),
                 ((0, 0), (0, N_PAD - D_OUT)),
                 constant_values=-1e30)                            # (1, 128)
    return {"w1": w1, "b1": b1, "w2": w2, "b2": b2, "w3": w3, "b3": b3}


@functools.partial(jax.jit, static_argnames=("tile_b",))
def fashion_network_forward(x, prepared, *, tile_b=1024):
    """x: [B, 728] (f32 or bf16).  prepared: output of prepare_params()."""
    B, F = x.shape
    assert F == D_IN, f"expected {D_IN} input features, got {F}"

    # Batch tile: multiple of 16 (bf16 sublane packing).  Cap at ceil(B/2) so
    # the grid has >=2 parallel tiles (v7x megacore); default 1024-row tiles
    # amortize per-step overhead on single-TC v5e/v6e.
    tb = _round_up(min(tile_b, max(16, _round_up(pl.cdiv(B, 2), 16))), 16)
    b_pad = _round_up(B, tb)
    if b_pad != B:
        # Single merged row-pad (only when needed); no column pad of x at all.
        x = jnp.pad(x, ((0, b_pad - B), (0, 0)))

    grid = (b_pad // tb,)

    w1, b1 = prepared["w1"], prepared["b1"]
    w2, b2 = prepared["w2"], prepared["b2"]
    w3, b3 = prepared["w3"], prepared["b3"]

    # VMEM-resident weights/biases via constant index_maps.
    const = lambda a: pl.BlockSpec(a.shape, lambda i: (0, 0))

    weight_bytes = 2 * (D_IN * D_H1 + D_H1 * D_H2 + D_H2 * N_PAD)  # bf16
    bias_bytes = 4 * (D_H1 + D_H2 + N_PAD)

    out = pl.pallas_call(
        _mlp_kernel,
        out_shape=jax.ShapeDtypeStruct((b_pad, N_PAD), jnp.float32),
        grid=grid,
        in_specs=[
            pl.BlockSpec((tb, D_IN), lambda i: (i, 0)),   # x: tiled over batch
            const(w1), const(b1),
            const(w2), const(b2),
            const(w3), const(b3),
        ],
        out_specs=pl.BlockSpec((tb, N_PAD), lambda i: (i, 0)),
        compiler_params=pltpu.CompilerParams(
            dimension_semantics=("parallel",),   # shard batch tiles over v7x TCs
            vmem_limit_bytes=32 << 20,           # safe under v7x's 64 MiB VMEM
        ),
        cost_estimate=pl.CostEstimate(
            flops=2 * b_pad * (D_IN * D_H1 + D_H1 * D_H2 + D_H2 * N_PAD),
            transcendentals=b_pad * (N_PAD + 1),
            bytes_accessed=(x.dtype.itemsize * b_pad * D_IN
                            + 4 * b_pad * N_PAD
                            + weight_bytes + bias_bytes),
        ),
    )(x, w1, b1, w2, b2, w3, b3)

    return out[:B, :D_OUT]


def init_params(key):
    """Deterministic parameter init (Kaiming-uniform-like, as in nn.Linear)."""
    def linear(key, fan_in, fan_out):
        kw, kb = jax.random.split(key)
        bound = 1.0 / jnp.sqrt(fan_in)
        w = jax.random.uniform(kw, (fan_in, fan_out), jnp.float32, -bound, bound)
        b = jax.random.uniform(kb, (1, fan_out), jnp.float32, -bound, bound)
        return w, b

    k1, k2, k3 = jax.random.split(key, 3)
    w1, b1 = linear(k1, D_IN, D_H1)
    w2, b2 = linear(k2, D_H1, D_H2)
    w3, b3 = linear(k3, D_H2, D_OUT)
    return {"w1": w1, "b1": b1, "w2": w2, "b2": b2, "w3": w3, "b3": b3}


def _reference_matched(x, p):
    """Pure-JAX reference with the same precision policy as the kernel
    (bf16 matmul operands, f32 accumulation / epilogue)."""
    cd = _COMPUTE_DTYPE
    h1 = jnp.maximum(
        jnp.dot(x.astype(cd), p["w1"].astype(cd),
                preferred_element_type=jnp.float32) + p["b1"], 0.0)
    h2 = jnp.maximum(
        jnp.dot(h1.astype(cd), p["w2"].astype(cd),
                preferred_element_type=jnp.float32) + p["b2"], 0.0)
    z = jnp.dot(h2.astype(cd), p["w3"].astype(cd),
                preferred_element_type=jnp.float32) + p["b3"]
    return jax.nn.log_softmax(z, axis=-1)


def _reference_f32(x, p):
    h1 = jnp.maximum(x @ p["w1"] + p["b1"], 0.0)
    h2 = jnp.maximum(h1 @ p["w2"] + p["b2"], 0.0)
    z = h2 @ p["w3"] + p["b3"]
    return jax.nn.log_softmax(z, axis=-1)


if __name__ == "__main__":
    key = jax.random.PRNGKey(0)
    kx, kp = jax.random.split(key)

    # Small deterministic test: B=48 exercises a 2-tile grid + batch-row pad.
    B = 48
    x = jax.random.normal(kx, (B, D_IN), dtype=jnp.float32)
    params = init_params(kp)
    prepared = prepare_params(params)

    out = fashion_network_forward(x, prepared)
    out = jax.block_until_ready(out)
    assert out.shape == (B, D_OUT)

    # Tight check vs. a precision-matched (bf16 operand / f32 accum) reference.
    ref = _reference_matched(x, params)
    assert jnp.allclose(out, ref, atol=2e-4, rtol=2e-4), "mismatch vs bf16 reference"

    # Loose sanity check vs. the full-f32 PyTorch-equivalent reference.
    ref32 = _reference_f32(x, params)
    assert jnp.allclose(out, ref32, atol=0.1, rtol=0.1), "mismatch vs f32 reference"

    print("KERNEL_OK")
</pallas_src>

<mosaic_0001>
module attributes {stable_mosaic.version = 11 : i64} {
  func.func @_mlp_kernel(%arg0: i32, %arg1: memref<32x728xf32, #tpu.memory_space<vmem>>, %arg2: memref<728x256xbf16, #tpu.memory_space<vmem>>, %arg3: memref<1x256xf32, #tpu.memory_space<vmem>>, %arg4: memref<256x128xbf16, #tpu.memory_space<vmem>>, %arg5: memref<1x128xf32, #tpu.memory_space<vmem>>, %arg6: memref<128x128xbf16, #tpu.memory_space<vmem>>, %arg7: memref<1x128xf32, #tpu.memory_space<vmem>>, %arg8: memref<32x128xf32, #tpu.memory_space<vmem>>) attributes {dimension_semantics = [#tpu.dimension_semantics<parallel>], iteration_bounds = array<i64: 2>, scalar_prefetch = 0 : i64, scratch_operands = 0 : i64, tpu.core_type = #tpu.core_type<tc>, window_params = [{transform_indices = @transform_0, window_bounds = array<i64: 32, 728>}, {pipeline_mode = #tpu.pipeline_mode<synchronous>, transform_indices = @transform_1, window_bounds = array<i64: 728, 256>}, {pipeline_mode = #tpu.pipeline_mode<synchronous>, transform_indices = @transform_2, window_bounds = array<i64: 1, 256>}, {pipeline_mode = #tpu.pipeline_mode<synchronous>, transform_indices = @transform_3, window_bounds = array<i64: 256, 128>}, {pipeline_mode = #tpu.pipeline_mode<synchronous>, transform_indices = @transform_4, window_bounds = array<i64: 1, 128>}, {pipeline_mode = #tpu.pipeline_mode<synchronous>, transform_indices = @transform_5, window_bounds = array<i64: 128, 128>}, {pipeline_mode = #tpu.pipeline_mode<synchronous>, transform_indices = @transform_6, window_bounds = array<i64: 1, 128>}, {transform_indices = @transform_7, window_bounds = array<i64: 32, 128>}]} {
    %c0 = arith.constant 0 : index
    %c0_0 = arith.constant 0 : index
    %0 = vector.load %arg1[%c0, %c0_0] : memref<32x728xf32, #tpu.memory_space<vmem>>, vector<32x728xf32>
    %1 = arith.truncf %0 : vector<32x728xf32> to vector<32x728xbf16>
    %c0_1 = arith.constant 0 : index
    %c0_2 = arith.constant 0 : index
    %2 = vector.load %arg2[%c0_1, %c0_2] : memref<728x256xbf16, #tpu.memory_space<vmem>>, vector<728x256xbf16>
    %cst = arith.constant dense<0.000000e+00> : vector<32x256xf32>
    %3 = tpu.matmul %1, %2, %cst {dimension_numbers = #tpu.dot_dimension_numbers<[1], [0], [0], [1], [0, 0, 1, 1], [], []>} : vector<32x728xbf16>, vector<728x256xbf16>, vector<32x256xf32> -> vector<32x256xf32>
    %c0_3 = arith.constant 0 : index
    %c0_4 = arith.constant 0 : index
    %4 = vector.load %arg3[%c0_3, %c0_4] : memref<1x256xf32, #tpu.memory_space<vmem>>, vector<1x256xf32>
    %5 = vector.broadcast %4 : vector<1x256xf32> to vector<32x256xf32>
    %6 = arith.addf %3, %5 : vector<32x256xf32>
    %cst_5 = arith.constant 0.000000e+00 : f32
    %7 = vector.broadcast %cst_5 : f32 to vector<32x256xf32>
    %8 = arith.maximumf %6, %7 : vector<32x256xf32>
    %9 = arith.truncf %8 : vector<32x256xf32> to vector<32x256xbf16>
    %c0_6 = arith.constant 0 : index
    %c0_7 = arith.constant 0 : index
    %10 = vector.load %arg4[%c0_6, %c0_7] : memref<256x128xbf16, #tpu.memory_space<vmem>>, vector<256x128xbf16>
    %cst_8 = arith.constant dense<0.000000e+00> : vector<32x128xf32>
    %11 = tpu.matmul %9, %10, %cst_8 {dimension_numbers = #tpu.dot_dimension_numbers<[1], [0], [0], [1], [0, 0, 1, 1], [], []>} : vector<32x256xbf16>, vector<256x128xbf16>, vector<32x128xf32> -> vector<32x128xf32>
    %c0_9 = arith.constant 0 : index
    %c0_10 = arith.constant 0 : index
    %12 = vector.load %arg5[%c0_9, %c0_10] : memref<1x128xf32, #tpu.memory_space<vmem>>, vector<1x128xf32>
    %13 = vector.broadcast %12 : vector<1x128xf32> to vector<32x128xf32>
    %14 = arith.addf %11, %13 : vector<32x128xf32>
    %cst_11 = arith.constant 0.000000e+00 : f32
    %15 = vector.broadcast %cst_11 : f32 to vector<32x128xf32>
    %16 = arith.maximumf %14, %15 : vector<32x128xf32>
    %17 = arith.truncf %16 : vector<32x128xf32> to vector<32x128xbf16>
    %c0_12 = arith.constant 0 : index
    %c0_13 = arith.constant 0 : index
    %18 = vector.load %arg6[%c0_12, %c0_13] : memref<128x128xbf16, #tpu.memory_space<vmem>>, vector<128x128xbf16>
    %cst_14 = arith.constant dense<0.000000e+00> : vector<32x128xf32>
    %19 = tpu.matmul %17, %18, %cst_14 {dimension_numbers = #tpu.dot_dimension_numbers<[1], [0], [0], [1], [0, 0, 1, 1], [], []>} : vector<32x128xbf16>, vector<128x128xbf16>, vector<32x128xf32> -> vector<32x128xf32>
    %c0_15 = arith.constant 0 : index
    %c0_16 = arith.constant 0 : index
    %20 = vector.load %arg7[%c0_15, %c0_16] : memref<1x128xf32, #tpu.memory_space<vmem>>, vector<1x128xf32>
    %21 = vector.broadcast %20 : vector<1x128xf32> to vector<32x128xf32>
    %22 = arith.addf %19, %21 : vector<32x128xf32>
    %cst_17 = arith.constant dense<0xFF800000> : vector<32xf32>
    %23 = vector.multi_reduction <maximumf>, %22, %cst_17 [1] : vector<32x128xf32> to vector<32xf32>
    %24 = vector.shape_cast %23 : vector<32xf32> to vector<32x1xf32>
    %25 = vector.broadcast %24 : vector<32x1xf32> to vector<32x128xf32>
    %26 = arith.subf %22, %25 : vector<32x128xf32>
    %27 = math.exp %26 : vector<32x128xf32>
    %cst_18 = arith.constant dense<0.000000e+00> : vector<32xf32>
    %28 = vector.multi_reduction <add>, %27, %cst_18 [1] : vector<32x128xf32> to vector<32xf32>
    %29 = vector.shape_cast %28 : vector<32xf32> to vector<32x1xf32>
    %30 = math.log %29 : vector<32x1xf32>
    %31 = vector.broadcast %30 : vector<32x1xf32> to vector<32x128xf32>
    %32 = arith.subf %26, %31 : vector<32x128xf32>
    %c0_19 = arith.constant 0 : index
    %c0_20 = arith.constant 0 : index
    %33 = vector.load %arg8[%c0_19, %c0_20] : memref<32x128xf32, #tpu.memory_space<vmem>>, vector<32x128xf32>
    tpu.vector_store %arg8[%c0_19, %c0_20], %32 {strides = array<i32>} : memref<32x128xf32, #tpu.memory_space<vmem>>, vector<32x128xf32>,
    return
  }
  func.func @transform_0(%arg0: i32) -> (i32, i32) {
    %c0_i32 = arith.constant 0 : i32
    %c0_i32_0 = arith.constant 0 : i32
    return %arg0, %c0_i32 : i32, i32
  }
  func.func @transform_1(%arg0: i32) -> (i32, i32) {
    %c0_i32 = arith.constant 0 : i32
    %c0_i32_0 = arith.constant 0 : i32
    %c0_i32_1 = arith.constant 0 : i32
    return %c0_i32, %c0_i32_0 : i32, i32
  }
  func.func @transform_2(%arg0: i32) -> (i32, i32) {
    %c0_i32 = arith.constant 0 : i32
    %c0_i32_0 = arith.constant 0 : i32
    %c0_i32_1 = arith.constant 0 : i32
    return %c0_i32, %c0_i32_0 : i32, i32
  }
  func.func @transform_3(%arg0: i32) -> (i32, i32) {
    %c0_i32 = arith.constant 0 : i32
    %c0_i32_0 = arith.constant 0 : i32
    %c0_i32_1 = arith.constant 0 : i32
    return %c0_i32, %c0_i32_0 : i32, i32
  }
  func.func @transform_4(%arg0: i32) -> (i32, i32) {
    %c0_i32 = arith.constant 0 : i32
    %c0_i32_0 = arith.constant 0 : i32
    %c0_i32_1 = arith.constant 0 : i32
    return %c0_i32, %c0_i32_0 : i32, i32
  }
  func.func @transform_5(%arg0: i32) -> (i32, i32) {
    %c0_i32 = arith.constant 0 : i32
    %c0_i32_0 = arith.constant 0 : i32
    %c0_i32_1 = arith.constant 0 : i32
    return %c0_i32, %c0_i32_0 : i32, i32
  }
  func.func @transform_6(%arg0: i32) -> (i32, i32) {
    %c0_i32 = arith.constant 0 : i32
    %c0_i32_0 = arith.constant 0 : i32
    %c0_i32_1 = arith.constant 0 : i32
    return %c0_i32, %c0_i32_0 : i32, i32
  }
  func.func @transform_7(%arg0: i32) -> (i32, i32) {
    %c0_i32 = arith.constant 0 : i32
    %c0_i32_0 = arith.constant 0 : i32
    return %arg0, %c0_i32 : i32, i32
  }
}

</mosaic_0001>

<bundles_post_ra>
// kernel: fashion_network_forward.1
= control target key start
LH: loop header
LB: loop body
LE: loop exit
PB: predicated region body
PF: predicated region fallthrough
CT: control target
= control target key end

     0   :  { %12 = vsyncpa [#allocation3], 0  ;;  %s2000_s24 = smov 0   ;;  %s2172_s0 = inlined_call_operand.vmem [shape: f32[64,728], index: 0, kind: input, shape index: {}]   ;;  %s2173_s1 = inlined_call_operand.hbm [shape: bf16[728,256], index: 1, kind: input, shape index: {}]   ;;  %s2174_s2 = inlined_call_operand.vmem [shape: f32[1,256], index: 2, kind: input, shape index: {}]   ;;  %s2175_s3 = inlined_call_operand.vmem [shape: bf16[256,128], index: 3, kind: input, shape index: {}]   ;;  %s2176_s4 = inlined_call_operand.vmem [shape: f32[1,128], index: 4, kind: input, shape index: {}]   ;;  %s2177_s5 = inlined_call_operand.vmem [shape: bf16[128,128], index: 5, kind: input, shape index: {}]   ;;  %s2178_s6 = inlined_call_operand.vmem [shape: f32[1,128], index: 6, kind: input, shape index: {}]   ;;  %s2179_s7 = inlined_call_operand.vmem [shape: f32[64,128], index: 7, kind: output, shape index: {}]  }
   0x1 LB: > { %s1502_s25 = sadd.s32 4294967295, %s1955_s24   ;;  %p1504_p0 = scmp.ge.s32.totalorder %s1955_s24, 1  ;;  %s1955_s24 = sphi %s2000_s24, %s18_s24  }
   0x2   : > { %p201_p1 = scmp.lt.s32.totalorder %s1955_s24, 3  ;;  %s1957_s26 = smov [#allocation2]  }
   0x3   : > { %s213_s27 = sshll.u32 %s1957_s26, 4  ;;  %p2014_p3 = scmp.eq.s32.totalorder %s1502_s25, 0  ;;  %s214_s27 = int_to_ptr.vmem [resolvable:$true] %s213_s27 }
   0x4   : > { %p2008_p2 = pnand %p1504_p0, %p201_p1  ;;  %s1917_s10 = scalar_lea.hbm %s2173_s1, 11648 }
   0x5   : > { %s2184_s29 = scalar_select %p2014_p3, 1, 0 }
   0x6   : > { %s2183_s28 = scalar_select %p2008_p2, 1, 0 }
   0x7   : > { %p1723_p4 = pneg %p2008_p2  ;;  %p1918_p6 = scmp.ne.s32.totalorder %s2173_s1, %s1917_s10 }
   0x8   : > { %p1924_p10 = scmp.lt.u32.totalorder %s1917_s10, %s2173_s1 }
   0x9   : > { %p2022_p5 = pnand %p2014_p3, %p1723_p4 }
   0xb   : > { %p1919_p7 = pneg %p2022_p5 }
   0xd   : > { %p1920_p8 = pnand %p1919_p7, %p1918_p6 }
   0xf   : > { %p1921_p9 = pneg %p1920_p8 }
  0x11   : > { %p1926_p11 = pnand %p1924_p10, %p1921_p9 }
  0x13   : > { %1929 = shalt.err (!%p1926_p11)
}
  0x14   : > { %s1930_s15 = scalar_lea.vmem %s214_s27, 11648  ;;  %p1938_p1 = scmp.lt.s32.totalorder %s214_s27, %s214_s27 }
  0x15   : > { %p1931_p12 = scmp.ne.s32.totalorder %s214_s27, %s1930_s15  ;;  %p1939_p4 = scmp.lt.s32.totalorder %s1930_s15, %s1930_s15 }
  0x17   : > { %p1933_p13 = pnand %p1931_p12, %p1919_p7  ;;  %p1940_p3 = por %p1939_p4, %p1938_p1 }
  0x19   : > { %p1934_p0 = pneg %p1933_p13 }
  0x1b   : > { %p1941_p2 = pnand %p1940_p3, %p1934_p0 }
  0x1d   : > { %1944 = shalt.err (!%p1941_p2)
}
  0x1e   : > { %s1958_s16 = smov 128   ;;  %s1959_s17 = smov 8  }
  0x1f   : > { %1726 = dma.hbm_to_vmem [thread:$0]  (!%p2022_p5), %s2173_s1, 11648, %s214_s27, [#allocation3], %s1958_s16, %s1958_s16, %s1959_s17  }
  0x20   : > { %p2186_p6 = scmp.ne.s32.totalorder %s2183_s28, 0 }
  0x21   : > { %p2187_p8 = scmp.ne.s32.totalorder (!%p2186_p6), %s2184_s29, 0 }
  0x22   : > { %254 = sbr.rel (%p2186_p6) target bundleno = 1154 (0x482), region = 48 }
  0x29   : > { %1950 = dma.done.wait (%p2187_p8), [#allocation3], 11648  }
  0x2a   : > { %1952 = vsyncadd (%p2187_p8), [#allocation3], 4294955648  ;;  %v1740_v0 = vld [vmem:[#allocation2 + $0x104] ss:$8 sps:$4 sm:$0xff]   ;;  %v1742_v1 = vld [vmem:[#allocation2 + $0x100] ss:$8 sps:$4 sm:$0xff]  }
  0x2b   : > { %962 = vmatprep.subr.bf16.mxu0 %v1740_v0  ;;  %v1743_v2 = vld [vmem:[#allocation2 + $0x114] ss:$8 sps:$4 sm:$0xff]   ;;  %v1745_v3 = vld [vmem:[#allocation2 + $0x110] ss:$8 sps:$4 sm:$0xff]   ;;  %v1746_v4 = vld [vmem:[#allocation2 + $0x124] ss:$8 sps:$4 sm:$0xff]  }
  0x2c   : > { %963 = vmatpush1.bf16.msra.mxu0 %v1742_v1  ;;  %v1748_v5 = vld [vmem:[#allocation2 + $0x120] ss:$8 sps:$4 sm:$0xff]   ;;  %v1749_v6 = vld [vmem:[#allocation2 + $0x134] ss:$8 sps:$4 sm:$0xff]   ;;  %s1509_s20 = sshll.u32 %s1502_s25, 2  ;;  %vm895_vm0 = vcmask 719872  }
  0x2d   : > { %964 = vmatprep.subr.bf16.mxu0 %v1743_v2  ;;  %v1751_v7 = vld [vmem:[#allocation2 + $0x130] ss:$8 sps:$4 sm:$0xff]   ;;  %p288_p2 = scmp.lt.s32.totalorder %s1509_s20, 7  ;;  %v1752_v8 = vld [vmem:[#allocation2 + $0x144] ss:$8 sps:$4 sm:$0xff]   ;;  %vm902_vm1 = vcmask 1043456  }
  0x2e   : > { %v1754_v9 = vld [vmem:[#allocation2 + $0x140] ss:$8 sps:$4 sm:$0xff]   ;;  %v1755_v10 = vld [vmem:[#allocation2 + $0x154] ss:$8 sps:$4 sm:$0xff]   ;;  %v1779_v11 = vld [vmem:[#allocation2 + $0x4] ss:$8 sps:$4 sm:$0xff]  }
  0x2f   : > { %s2189_s20 = smov (!%p288_p2, %s1509_s20), 7  ;;  %v1781_v12 = vld [vmem:[#allocation2] ss:$8 sps:$4 sm:$0xff]   ;;  %v1757_v13 = vld [vmem:[#allocation2 + $0x150] ss:$8 sps:$4 sm:$0xff]   ;;  %909 = vmatprep.subr.bf16.mxu1 %v1779_v11 }
  0x30   : > { %965 = vmatpush1.bf16.msra.mxu0 %v1745_v3  ;;  %v1758_v14 = vld [vmem:[#allocation2 + $0x164] ss:$8 sps:$4 sm:$0xff]   ;;  %s1718_s21 = smul.u32 48, %s2189_s20  ;;  %v1785_v15 = vld [vmem:[#allocation2 + $0x14] ss:$8 sps:$4 sm:$0xff]   ;;  %910 = vmatpush1.bf16.msra.mxu1 %v1781_v12  ;;  %s1512_s15 = sshll.u32 %s2189_s20, 3 }
  0x31   : > { %966 = vmatprep.subr.bf16.mxu0 %v1746_v4  ;;  %v1787_v16 = vld [vmem:[#allocation2 + $0x10] ss:$8 sps:$4 sm:$0xff]   ;;  %911 = vmatprep.subr.bf16.mxu1 %v1785_v15  ;;  %v1760_v17 = vld [vmem:[#allocation2 + $0x160] ss:$8 sps:$4 sm:$0xff]   ;;  %v1791_v18 = vld [vmem:[#allocation2 + $0x24] ss:$8 sps:$4 sm:$0xff]   ;;  %s298_s18 = scalar_lea.vmem %s2179_s7, %s1512_s15 }
  0x32   : > { %s2056_s25 = scalar_lea.vmem %s2172_s0, %s1718_s21  ;;  %v1761_v19 = vld [vmem:[#allocation2 + $0x174] ss:$8 sps:$4 sm:$0xff]   ;;  %v1793_v20 = vld [vmem:[#allocation2 + $0x20] ss:$8 sps:$4 sm:$0xff]   ;;  %v1763_v21 = vld [vmem:[#allocation2 + $0x170] ss:$8 sps:$4 sm:$0xff]  }
  0x33   : > { %v1797_v22 = vld [vmem:[#allocation2 + $0x34] ss:$8 sps:$4 sm:$0xff]   ;;  %v310_v24 = vld [vmem:[%s2056_s25 + $0x48] sm:$0xff]  ;;  %v1799_v27 = vld [vmem:[#allocation2 + $0x30] ss:$8 sps:$4 sm:$0xff]  }
  0x34   : > { %967 = vmatpush1.bf16.msra.mxu0 %v1748_v5  ;;  %912 = vmatpush1.bf16.msra.mxu1 %v1787_v16  ;;  %v304_v23 = vld [vmem:[%s2056_s25 + $0x18] sm:$0xff]  ;;  %v1764_v25 = vld [vmem:[#allocation2 + $0x184] ss:$8 sps:$4 sm:$0xff]   ;;  %v1766_v29 = vld [vmem:[#allocation2 + $0x180] ss:$8 sps:$4 sm:$0xff]  }
  0x35   : > { %968 = vmatprep.subr.bf16.mxu0 %v1749_v6  ;;  %913 = vmatprep.subr.bf16.mxu1 %v1791_v18  ;;  %v328_v26 = vpack.c.bf16 %v310_v24, %v304_v23  ;;  %v1803_v28 = vld [vmem:[#allocation2 + $0x44] ss:$8 sps:$4 sm:$0xff]   ;;  %v1767_v30 = vld [vmem:[#allocation2 + $0x194] ss:$8 sps:$4 sm:$0xff]   ;;  %v1805_v31 = vld [vmem:[#allocation2 + $0x40] ss:$8 sps:$4 sm:$0xff]  }
  0x36   : > { %v1809_v32 = vld [vmem:[#allocation2 + $0x54] ss:$8 sps:$4 sm:$0xff]   ;;  %v1769_v33 = vld [vmem:[#allocation2 + $0x190] ss:$8 sps:$4 sm:$0xff]   ;;  %v1770_v34 = vld [vmem:[#allocation2 + $0x1a4] ss:$8 sps:$4 sm:$0xff]  }
  0x37   : > { %994 = vmatprep.mubr.bf16.mxu0 %v328_v26  ;;  %v1811_v35 = vld [vmem:[#allocation2 + $0x50] ss:$8 sps:$4 sm:$0xff]   ;;  %v1815_v36 = vld [vmem:[#allocation2 + $0x64] ss:$8 sps:$4 sm:$0xff]   ;;  %v1772_v37 = vld [vmem:[#allocation2 + $0x1a0] ss:$8 sps:$4 sm:$0xff]  }
  0x38   : > { %969 = vmatpush1.bf16.msra.mxu0 %v1751_v7  ;;  %914 = vmatpush1.bf16.msra.mxu1 %v1793_v20  ;;  %v1773_v38 = vld [vmem:[#allocation2 + $0x1b4] ss:$8 sps:$4 sm:$0xff]   ;;  %v1817_v39 = vld [vmem:[#allocation2 + $0x60] ss:$8 sps:$4 sm:$0xff]   ;;  %v1775_v41 = vld [vmem:[#allocation2 + $0x1b0] ss:$8 sps:$4 sm:$0xff]  }
  0x39   : > { %970 = vmatprep.subr.bf16.mxu0 %v1752_v8  ;;  %915 = vmatprep.subr.bf16.mxu1 %v1797_v22  ;;  %v1821_v40 = vld [vmem:[#allocation2 + $0x74] ss:$8 sps:$4 sm:$0xff]   ;;  %v1776_v42 = vld [vmem:[#allocation2 + $0x1c4] ss:$8 sps:$4 sm:$0xff]   ;;  %v1823_v43 = vld [vmem:[#allocation2 + $0x70] ss:$8 sps:$4 sm:$0xff]  }
  0x3a   : > { %v1827_v44 = vld [vmem:[#allocation2 + $0x84] ss:$8 sps:$4 sm:$0xff]   ;;  %v1778_v45 = vld [vmem:[#allocation2 + $0x1c0] ss:$8 sps:$4 sm:$0xff]   ;;  %v1782_v46 = vld [vmem:[#allocation2 + $0x1d4] ss:$8 sps:$4 sm:$0xff]  }
  0x3b   : > { %v1829_v47 = vld [vmem:[#allocation2 + $0x80] ss:$8 sps:$4 sm:$0xff]   ;;  %v1833_v48 = vld [vmem:[#allocation2 + $0x94] ss:$8 sps:$4 sm:$0xff]   ;;  %v1784_v49 = vld [vmem:[#allocation2 + $0x1d0] ss:$8 sps:$4 sm:$0xff]  }
  0x3c   : > { %971 = vmatpush1.bf16.msra.mxu0 %v1754_v9  ;;  %916 = vmatpush1.bf16.msra.mxu1 %v1799_v27  ;;  %v1788_v50 = vld [vmem:[#allocation2 + $0x1e4] ss:$8 sps:$4 sm:$0xff]   ;;  %v1835_v51 = vld [vmem:[#allocation2 + $0x90] ss:$8 sps:$4 sm:$0xff]   ;;  %v1790_v53 = vld [vmem:[#allocation2 + $0x1e0] ss:$8 sps:$4 sm:$0xff]  }
  0x3d   : > { %972 = vmatprep.subr.bf16.mxu0 %v1755_v10  ;;  %917 = vmatprep.subr.bf16.mxu1 %v1803_v28  ;;  %v1839_v52 = vld [vmem:[#allocation2 + $0xa4] ss:$8 sps:$4 sm:$0xff]   ;;  %v1794_v54 = vld [vmem:[#allocation2 + $0x1f4] ss:$8 sps:$4 sm:$0xff]   ;;  %v1841_v55 = vld [vmem:[#allocation2 + $0xa0] ss:$8 sps:$4 sm:$0xff]  }
  0x3e   : > { %v1796_v56 = vld [vmem:[#allocation2 + $0x1f0] ss:$8 sps:$4 sm:$0xff]   ;;  %v1845_v57 = vld [vmem:[#allocation2 + $0xb4] ss:$8 sps:$4 sm:$0xff]   ;;  %v309_v59 = vld [vmem:[%s2056_s25 + $0x40] sm:$0xff] }
  0x3f   : > { %v303_v58 = vld [vmem:[%s2056_s25 + $0x10] sm:$0xff]  ;;  %v1802_v60 = vld [vmem:[#allocation2 + $0x204] ss:$8 sps:$4 sm:$0xff]   ;;  %v316_v61 = vld [vmem:[%s2056_s25 + $0x78] sm:$0xff] }
  0x40   : > { %973 = vmatpush1.bf16.msra.mxu0 %v1757_v13  ;;  %918 = vmatpush1.bf16.msra.mxu1 %v1805_v31  ;;  %v322_v62 = vld [vmem:[%s2056_s25 + $0xa8] sm:$0xff]  ;;  %v1847_v63 = vld [vmem:[#allocation2 + $0xb0] ss:$8 sps:$4 sm:$0xff]   ;;  %v327_v0 = vpack.c.bf16 %v309_v59, %v303_v58  ;;  %v1808_v6 = vld [vmem:[#allocation2 + $0x214] ss:$8 sps:$4 sm:$0xff]  }
  0x41   : > { %974 = vmatprep.subr.bf16.mxu0 %v1758_v14  ;;  %919 = vmatprep.subr.bf16.mxu1 %v1809_v32  ;;  %v1851_v1 = vld [vmem:[#allocation2 + $0xc4] ss:$8 sps:$4 sm:$0xff]   ;;  %v1800_v3 = vld [vmem:[#allocation2 + $0x200] ss:$8 sps:$4 sm:$0xff]   ;;  %v334_v4 = vpack.c.bf16 %v322_v62, %v316_v61  ;;  %v308_v5 = vld [vmem:[%s2056_s25 + $0x38] sm:$0xff] }
  0x42   : > { %v302_v2 = vld [vmem:[%s2056_s25 + $0x8] sm:$0xff]  ;;  %v1806_v9 = vld [vmem:[#allocation2 + $0x210] ss:$8 sps:$4 sm:$0xff]   ;;  %v1857_v11 = vld [vmem:[#allocation2 + $0xd4] ss:$8 sps:$4 sm:$0xff]  }
  0x43   : > { %v326_v7 = vpack.c.bf16 %v308_v5, %v302_v2  ;;  %v1853_v8 = vld [vmem:[#allocation2 + $0xc0] ss:$8 sps:$4 sm:$0xff]   ;;  %v1814_v10 = vld [vmem:[#allocation2 + $0x224] ss:$8 sps:$4 sm:$0xff]   ;;  %v315_v12 = vld [vmem:[%s2056_s25 + $0x70] sm:$0xff] }
  0x44   : > { %975 = vmatpush1.bf16.msra.mxu0 %v1760_v17  ;;  %920 = vmatpush1.bf16.msra.mxu1 %v1811_v35  ;;  %v321_v13 = vld [vmem:[%s2056_s25 + $0xa0] sm:$0xff]  ;;  %v306_v14 = vld [vmem:[%s2056_s25 + $0x28] sm:$0xff]  ;;  %v312_v15 = vld [vmem:[%s2056_s25 + $0x58] sm:$0xff] }
  0x45   : > { %976 = vmatprep.subr.bf16.mxu0 %v1761_v19  ;;  %921 = vmatprep.subr.bf16.mxu1 %v1815_v36  ;;  %v1859_v16 = vld [vmem:[#allocation2 + $0xd0] ss:$8 sps:$4 sm:$0xff]   ;;  %v1863_v17 = vld [vmem:[#allocation2 + $0xe4] ss:$8 sps:$4 sm:$0xff]   ;;  %v333_v18 = vpack.c.bf16 %v321_v13, %v315_v12  ;;  %v1812_v19 = vld [vmem:[#allocation2 + $0x220] ss:$8 sps:$4 sm:$0xff]   ;;  %v330_v20 = vpack.c.bf16 %v312_v15, %v306_v14 }
  0x46   : > { %941 = vmatprep.mubr.bf16.mxu1 %v326_v7  ;;  %v1818_v22 = vld [vmem:[#allocation2 + $0x230] ss:$8 sps:$4 sm:$0xff]   ;;  %v1865_v23 = vld [vmem:[#allocation2 + $0xe0] ss:$8 sps:$4 sm:$0xff]   ;;  %v1826_v24 = vld [vmem:[#allocation2 + $0x244] ss:$8 sps:$4 sm:$0xff]  }
  0x47   : > { %v1871_v26 = vld [vmem:[#allocation2 + $0xf0] ss:$8 sps:$4 sm:$0xff]   ;;  %v301_v27 = vld [vmem:[%s2056_s25] sm:$0xff]  ;;  %v1879_v36 = vld [vmem:[%s2175_s3 + $0x48] sm:$0xff]  }
  0x48   : > { %977 = vmatpush1.bf16.msra.mxu0 %v1763_v21  ;;  %922 = vmatpush1.bf16.msra.mxu1 %v1817_v39  ;;  %v1820_v21 = vld [vmem:[#allocation2 + $0x234] ss:$8 sps:$4 sm:$0xff]   ;;  %v1877_v31 = vld [vmem:[%s2175_s3 + $0x40] sm:$0xff]   ;;  %v1866_v58 = vld [vmem:[#allocation2 + $0x2b0] ss:$8 sps:$4 sm:$0xff]  }
  0x49   : > { %978 = vmatprep.subr.bf16.mxu0 %v1764_v25  ;;  %923 = vmatprep.subr.bf16.mxu1 %v1821_v40  ;;  %v1869_v25 = vld [vmem:[#allocation2 + $0xf4] ss:$8 sps:$4 sm:$0xff]   ;;  %v1824_v32 = vld [vmem:[#allocation2 + $0x240] ss:$8 sps:$4 sm:$0xff]   ;;  %v1838_v39 = vld [vmem:[#allocation2 + $0x264] ss:$8 sps:$4 sm:$0xff]  }
  0x4a   : > { %v307_v28 = vld [vmem:[%s2056_s25 + $0x30] sm:$0xff]  ;;  %v313_v40 = vld [vmem:[%s2056_s25 + $0x60] sm:$0xff]  ;;  %v1887_v12 = vld [vmem:[%s2175_s3 + $0x68] sm:$0xff]  }
  0x4b   : > { %v325_v35 = vpack.c.bf16 %v307_v28, %v301_v27  ;;  %v1874_v59 = vld [vmem:[#allocation2 + $0x2c4] ss:$8 sps:$4 sm:$0xff]   ;;  %v1872_v61 = vld [vmem:[#allocation2 + $0x2c0] ss:$8 sps:$4 sm:$0xff]   ;;  %v1889_v14 = vld [vmem:[%s2175_s3 + $0x70] sm:$0xff]   ;;  %v430_v27 = vlaneseq }
  0x4c   : > { %979 = vmatpush1.bf16.msra.mxu0 %v1766_v29  ;;  %924 = vmatpush1.bf16.msra.mxu1 %v1823_v43  ;;  %v314_v29 = vld [vmem:[%s2056_s25 + $0x68] sm:$0xff]  ;;  %v1881_v43 = vld [vmem:[%s2175_s3 + $0x50] sm:$0xff]   ;;  %v317_v7 = vld [vmem:[%s2056_s25 + $0x80] sm:$0xff] }
  0x4d   : > { %980 = vmatprep.subr.bf16.mxu0 %v1767_v30  ;;  %925 = vmatprep.subr.bf16.mxu1 %v1827_v44  ;;  %v320_v30 = vld [vmem:[%s2056_s25 + $0x98] sm:$0xff]  ;;  %v1836_v44 = vld [vmem:[#allocation2 + $0x260] ss:$8 sps:$4 sm:$0xff]   ;;  %v1890_v15 = vld [vmem:[%s2175_s3 + $0x30] sm:$0xff]   ;;  %v431_v28 = vshrl.u32 %v430_v27, 7 }
  0x4e   : > { %v1888_v13 = vld [vmem:[%s2175_s3 + $0x28] sm:$0xff]  }
  0x50   : > { %981 = vmatpush1.bf16.msra.mxu0 %v1769_v33  ;;  %926 = vmatpush1.bf16.msra.mxu1 %v1829_v47  ;;  %v1832_v33 = vld [vmem:[#allocation2 + $0x254] ss:$8 sps:$4 sm:$0xff]  }
  0x51   : > { %982 = vmatprep.subr.bf16.mxu0 %v1770_v34  ;;  %927 = vmatprep.subr.bf16.mxu1 %v1833_v48  ;;  %v1878_v34 = vld [vmem:[%s2175_s3] sm:$0xff]   ;;  %v1882_v47 = vld [vmem:[%s2175_s3 + $0x10] sm:$0xff]   ;;  %v1883_v48 = vld [vmem:[%s2175_s3 + $0x58] sm:$0xff]  }
  0x54   : > { %983 = vmatpush1.bf16.msra.mxu0 %v1772_v37  ;;  %928 = vmatpush1.bf16.msra.mxu1 %v1835_v51  ;;  %v1830_v37 = vld [vmem:[#allocation2 + $0x250] ss:$8 sps:$4 sm:$0xff]  }
  0x55   : > { %984 = vmatprep.subr.bf16.mxu0 %v1773_v38  ;;  %929 = vmatprep.subr.bf16.mxu1 %v1839_v52  ;;  %v332_v38 = vpack.c.bf16 %v320_v30, %v314_v29  ;;  %v1884_v51 = vld [vmem:[%s2175_s3 + $0x18] sm:$0xff]   ;;  %v1848_v52 = vld [vmem:[#allocation2 + $0x280] ss:$8 sps:$4 sm:$0xff]   ;;  %v432_v29 = vsub.s32 0, %v431_v28 }
  0x56   : > { %v428_v30 = vld [vmem:[%s2174_s2] sm:$0x3] }
  0x58   : > { %985 = vmatpush1.bf16.msra.mxu0 %v1775_v41  ;;  %930 = vmatpush1.bf16.msra.mxu1 %v1841_v55  ;;  %v319_v41 = vld [vmem:[%s2056_s25 + $0x90] sm:$0xff]  ;;  %v1862_v55 = vld [vmem:[#allocation2 + $0x2a4] ss:$8 sps:$4 sm:$0xff]  }
  0x59   : > { %986 = vmatprep.subr.bf16.mxu0 %v1776_v42  ;;  %931 = vmatprep.subr.bf16.mxu1 %v1845_v57  ;;  %v1880_v42 = vld [vmem:[%s2175_s3 + $0x8] sm:$0xff]   ;;  %v1868_v57 = vld [vmem:[#allocation2 + $0x2b4] ss:$8 sps:$4 sm:$0xff]  }
  0x5c   : > { %987 = vmatpush1.bf16.msra.mxu0 %v1778_v45  ;;  %932 = vmatpush1.bf16.msra.mxu1 %v1847_v63  ;;  %v1844_v45 = vld [vmem:[#allocation2 + $0x274] ss:$8 sps:$4 sm:$0xff]  }
  0x5d   : > { %988 = vmatprep.subr.bf16.mxu0 %v1782_v46  ;;  %933 = vmatprep.subr.bf16.mxu1 %v1851_v1  ;;  %v331_v46 = vpack.c.bf16 %v319_v41, %v313_v40  ;;  %v311_v1 = vld [vmem:[%s2056_s25 + $0x50] sm:$0xff] }
  0x60   : > { %989 = vmatpush1.bf16.msra.mxu0 %v1784_v49  ;;  %934 = vmatpush1.bf16.msra.mxu1 %v1853_v8  ;;  %v1842_v49 = vld [vmem:[#allocation2 + $0x270] ss:$8 sps:$4 sm:$0xff]  }
  0x61   : > { %990 = vmatprep.subr.bf16.mxu0 %v1788_v50  ;;  %935 = vmatprep.subr.bf16.mxu1 %v1857_v11  ;;  %v1850_v50 = vld [vmem:[#allocation2 + $0x284] ss:$8 sps:$4 sm:$0xff]   ;;  %v323_v8 = vld [vmem:[%s2056_s25 + $0xb0] sm:$0xff] }
  0x62   : > { %v1886_v11 = vld [vmem:[%s2175_s3 + $0x20] sm:$0xff]  }
  0x64   : > { %991 = vmatpush1.bf16.msra.mxu0 %v1790_v53  ;;  %936 = vmatpush1.bf16.msra.mxu1 %v1859_v16  ;;  %v1856_v53 = vld [vmem:[#allocation2 + $0x294] ss:$8 sps:$4 sm:$0xff]  }
  0x65   : > { %992 = vmatprep.subr.bf16.mxu0 %v1794_v54  ;;  %937 = vmatprep.subr.bf16.mxu1 %v1863_v17  ;;  %v1854_v54 = vld [vmem:[#allocation2 + $0x290] ss:$8 sps:$4 sm:$0xff]  }
  0x66   : > { %v1891_v16 = vld [vmem:[%s2175_s3 + $0x78] sm:$0xff]  }
  0x67   : > { %v1892_v17 = vld [vmem:[%s2175_s3 + $0x38] sm:$0xff]  }
  0x68   : > { %993 = vmatpush1.bf16.msra.mxu0 %v1796_v56  ;;  %938 = vmatpush1.bf16.msra.mxu1 %v1865_v23  ;;  %v1860_v56 = vld [vmem:[#allocation2 + $0x2a0] ss:$8 sps:$4 sm:$0xff]  }
  0x69   : > { %1015 = vmatprep.subr.bf16.mxu0 %v1802_v60  ;;  %939 = vmatprep.subr.bf16.mxu1 %v1869_v25  ;;  %v427_v60 = vld [vmem:[#allocation2 + $0x2d0] sm:$0xff] }
  0x6a   : > { %v1604_v62 = vcombine.high %v427_v60, %v427_v60  ;;  %v1603_v63 = vcombine.low %v427_v60, %v427_v60 }
  0x6b   : > { %995 = vmatmul.mubr.bf16.vlgmr.msra.gmra.mrb[0].mxu0 %v327_v0  ;;  %v305_v0 = vld [vmem:[%s2056_s25 + $0x20] sm:$0xff] }
  0x6c   : > { %1016 = vmatpush1.bf16.msra.mxu0 %v1800_v3  ;;  %1004 = vmatprep.mubr.bf16.mxu0 %v334_v4  ;;  %v904_v2 = vsel %vm902_vm1, %v1603_v63, 0  ;;  %v318_v3 = vld [vmem:[%s2056_s25 + $0x88] sm:$0xff]  ;;  %v324_v4 = vld [vmem:[%s2056_s25 + $0xb8] sm:$0xff]  ;;  %v329_v5 = vpack.c.bf16 %v311_v1, %v305_v0 }
  0x6d   : > { %1017 = vmatprep.subr.bf16.mxu0 %v1808_v6  ;;  %940 = vmatpush1.bf16.msra.mxu1 %v1871_v26  ;;  %v336_v6 = vpack.c.bf16 %v324_v4, %v318_v3  ;;  %v1895_v3 = vld [vmem:[%s2177_s5 + $0x10] sm:$0xff]  }
  0x6e   : > { %1636 = vmatprep.subr.bf16.mxu1 %v1877_v31  ;;  %v436_v31 = vsub.s32 1, %v431_v28 }
  0x70   : > { %1018 = vmatpush1.bf16.msra.mxu0 %v1806_v9  ;;  %942 = vmatmul.mubr.bf16.vlgmr.msra.gmra.mrb[0].mxu1 %v325_v35  ;;  %v335_v9 = vpack.c.bf16 %v323_v8, %v317_v7  ;;  %v1896_v8 = vld [vmem:[%s2177_s5 + $0x18] sm:$0xff]  }
  0x71   : > { %1019 = vmatprep.subr.bf16.mxu0 %v1814_v10  ;;  %951 = vmatprep.mubr.bf16.mxu1 %v332_v38  ;;  %v1885_v10 = vld [vmem:[%s2175_s3 + $0x60] sm:$0xff]  }
  0x72   : > { %1637 = vmatpush3.bf16.msra.mxu1 %v1878_v34 }
  0x73   : > { %1005 = vmatmul.mubr.bf16.gmra.mrb[4].mxu0 %v333_v18  ;;  %1638 = vmatprep.subr.bf16.mxu1 %v1879_v36  ;;  %v1893_v18 = vld [vmem:[%s2177_s5] sm:$0xff]  }
  0x74   : > { %1020 = vmatpush1.bf16.msra.mxu0 %v1812_v19  ;;  %1606 = vmatprep.mubr.msk.bf16.mxu0 %vm895_vm0, %v330_v20 }
  0x75   : > { %1021 = vmatprep.subr.bf16.mxu0 %v1820_v21 }
  0x76   : > { %1639 = vmatpush3.bf16.msra.mxu1 %v1880_v42 }
  0x77   : > { %1640 = vmatprep.subr.bf16.mxu1 %v1881_v43 }
  0x78   : > { %1022 = vmatpush1.bf16.msra.mxu0 %v1818_v22  ;;  %952 = vmatmul.mubr.bf16.gmra.mrb[4].mxu1 %v331_v46 }
  0x79   : > { %1023 = vmatprep.subr.bf16.mxu0 %v1826_v24 }
  0x7a   : > { %1641 = vmatpush3.bf16.msra.mxu1 %v1882_v47 }
  0x7b   : > { %1642 = vmatprep.subr.bf16.mxu1 %v1883_v48 }
  0x7c   : > { %1024 = vmatpush1.bf16.msra.mxu0 %v1824_v32  ;;  %v433_v32 = vrot.slane %v428_v30, %v432_v29 }
  0x7d   : > { %1025 = vmatprep.subr.bf16.mxu0 %v1832_v33  ;;  %v437_v33 = vrot.slane %v428_v30, %v436_v31 }
  0x7e   : > { %1643 = vmatpush3.bf16.msra.mxu1 %v1884_v51 }
  0x7f   : > { %1644 = vmatprep.subr.bf16.mxu1 %v1885_v10  ;;  %v1898_v10 = vld [vmem:[%s2177_s5 + $0x28] sm:$0xff]  }
  0x80   : > { %1026 = vmatpush1.bf16.msra.mxu0 %v1830_v37 }
  0x81   : > { %1027 = vmatprep.subr.bf16.mxu0 %v1838_v39 }
  0x82   : > { %1645 = vmatpush3.bf16.msra.mxu1 %v1886_v11  ;;  %v1899_v11 = vld [vmem:[%s2177_s5 + $0x30] sm:$0xff]  }
  0x83   : > { %1646 = vmatprep.subr.bf16.mxu1 %v1887_v12  ;;  %v1900_v12 = vld [vmem:[%s2177_s5 + $0x38] sm:$0xff]  }
  0x84   : > { %1028 = vmatpush1.bf16.msra.mxu0 %v1836_v44 }
  0x85   : > { %1029 = vmatprep.subr.bf16.mxu0 %v1844_v45 }
  0x86   : > { %1647 = vmatpush3.bf16.msra.mxu1 %v1888_v13 }
  0x87   : > { %1648 = vmatprep.subr.bf16.mxu1 %v1889_v14  ;;  %v1608_v14 = vld [vmem:[%s2176_s4] ss:$0 sm:$0xff] }
  0x88   : > { %1030 = vmatpush1.bf16.msra.mxu0 %v1842_v49 }
  0x89   : > { %1031 = vmatprep.subr.bf16.mxu0 %v1850_v50 }
  0x8a   : > { %1649 = vmatpush3.bf16.msra.mxu1 %v1890_v15 }
  0x8b   : > { %1650 = vmatprep.subr.bf16.mxu1 %v1891_v16 }
  0x8c   : > { %1032 = vmatpush1.bf16.msra.mxu0 %v1848_v52 }
  0x8d   : > { %1033 = vmatprep.subr.bf16.mxu0 %v1856_v53 }
  0x8e   : > { %1651 = vmatpush3.bf16.msra.mxu1 %v1892_v17 }
  0x8f   : > { %1674 = vmatprep.subr.bf16.mxu1 %v1893_v18 }
  0x90   : > { %1034 = vmatpush1.bf16.msra.mxu0 %v1854_v54 }
  0x91   : > { %1035 = vmatprep.subr.bf16.mxu0 %v1862_v55 }
  0x94   : > { %1036 = vmatpush1.bf16.msra.mxu0 %v1860_v56 }
  0x95   : > { %1037 = vmatprep.subr.bf16.mxu0 %v1868_v57 }
  0x98   : > { %1038 = vmatpush1.bf16.msra.mxu0 %v1866_v58  ;;  %v1894_v58 = vld [vmem:[%s2177_s5 + $0x8] sm:$0xff]  }
  0x99   : > { %1039 = vmatprep.subr.bf16.mxu0 %v1874_v59 }
  0x9c   : > { %1040 = vmatpush1.bf16.msra.mxu0 %v1872_v61 }
  0x9d   : > { %1605 = vmatprep.subr.msk.bf16.mxu0 %vm902_vm1, %v1604_v62 }
  0xa0   : > { %1042 = vmatpush1.bf16.msra.mxu0 %v904_v2 }
  0xa3   : > { %1048 = vmatmul.mubr.bf16.vlgmr.msra.gmra.mrb[0].mxu0 %v329_v5 }
  0xa4   : > { %1607 = vmatprep.mubr.msk.bf16.mxu0 %vm895_vm0, %v336_v6 }
  0xab   : > { %1058 = vmatmul.mubr.bf16.gmra.mrb[4].mxu0 %v335_v9  ;;  %v1897_v9 = vld [vmem:[%s2177_s5 + $0x20] sm:$0xff]  }
 0x143   : > { %v943_v19 = vpop.f32.mrb[0].mxu1 }
 0x144   : > { %v945_v20 = vpop.f32.mrb[1].mxu1  ;;  %v944_v34 = vadd.f32 %v943_v19, %v433_v32 }
 0x145   : > { %v947_v21 = vpop.f32.mrb[2].mxu1  ;;  %v946_v35 = vadd.f32 %v945_v20, %v437_v33 }
 0x146   : > { %v949_v22 = vpop.f32.mrb[3].mxu1  ;;  %v948_v37 = vadd.f32 %v947_v21, %v433_v32 }
 0x147   : > { %v950_v40 = vadd.f32 %v949_v22, %v437_v33 }
 0x14b   : > { %v953_v23 = vpop.f32.mrb[4].mxu1 }
 0x14c   : > { %v955_v24 = vpop.f32.mrb[5].mxu1  ;;  %v954_v48 = vadd.f32 %v953_v23, %v433_v32 }
 0x14d   : > { %v957_v25 = vpop.f32.mrb[6].mxu1  ;;  %v956_v51 = vadd.f32 %v955_v24, %v437_v33 }
 0x14e   : > { %v959_v26 = vpop.f32.mrb[7].mxu1  ;;  %v958_v55 = vadd.f32 %v957_v25, %v433_v32 }
 0x14f   : > { %v960_v59 = vadd.f32 %v959_v26, %v437_v33 }
 0x176   : > { %v1049_v36 = vpop.f32.mrb[0].mxu0 }
 0x177   : > { %v1695_v38 = vadd.f32 %v1049_v36, %v944_v34  ;;  %v1051_v39 = vpop.f32.mrb[1].mxu0  ;;  %v1625_v36 = vld [vmem:[%s2178_s6] ss:$0 sm:$0xff] }
 0x178   : > { %v1697_v41 = vadd.f32 %v1051_v39, %v946_v35  ;;  %v1053_v42 = vpop.f32.mrb[2].mxu0 }
 0x179   : > { %v1699_v43 = vadd.f32 %v1053_v42, %v948_v37  ;;  %v1055_v44 = vpop.f32.mrb[3].mxu0  ;;  %v1068_v46 = vmax.f32 %v1695_v38, 0.0 }
 0x17a   : > { %v1701_v45 = vadd.f32 %v1055_v44, %v950_v40  ;;  %v1069_v49 = vmax.f32 %v1697_v41, 0.0 }
 0x17b   : > { %v1070_v47 = vmax.f32 %v1699_v43, 0.0 }
 0x17c   : > { %v1071_v50 = vmax.f32 %v1701_v45, 0.0 }
 0x17d   : > { %v1076_v52 = vpack.c.bf16 %v1070_v47, %v1068_v46 }
 0x17e   : > { %v1077_v53 = vpack.c.bf16 %v1071_v50, %v1069_v49  ;;  %v1059_v54 = vpop.f32.mrb[4].mxu0 }
 0x17f   : > { %v1703_v56 = vadd.f32 %v1059_v54, %v954_v48  ;;  %v1061_v57 = vpop.f32.mrb[5].mxu0 }
 0x180   : > { %v1705_v60 = vadd.f32 %v1061_v57, %v956_v51  ;;  %v1063_v61 = vpop.f32.mrb[6].mxu0  ;;  %1247 = vmatprep.mubr.bf16.mxu1 %v1077_v53 }
 0x181   : > { %v1707_v62 = vadd.f32 %v1063_v61, %v958_v55  ;;  %v1065_v63 = vpop.f32.mrb[7].mxu0  ;;  %1248 = vmatmul.mubr.bf16.vlgmr.msra.gmra.mrb[8].mxu1 %v1076_v52  ;;  %v1072_v1 = vmax.f32 %v1703_v56, 0.0 }
 0x182   : > { %v1709_v0 = vadd.f32 %v1065_v63, %v960_v59  ;;  %1675 = vmatpush3.bf16.msra.mxu1 %v1893_v18  ;;  %v1073_v4 = vmax.f32 %v1705_v60, 0.0 }
 0x183   : > { %v1074_v2 = vmax.f32 %v1707_v62, 0.0  ;;  %1676 = vmatprep.subr.bf16.mxu1 %v1894_v58 }
 0x184   : > { %v1075_v5 = vmax.f32 %v1709_v0, 0.0 }
 0x185   : > { %v1078_v6 = vpack.c.bf16 %v1074_v2, %v1072_v1 }
 0x186   : > { %v1079_v7 = vpack.c.bf16 %v1075_v5, %v1073_v4  ;;  %1677 = vmatpush3.bf16.msra.mxu1 %v1894_v58 }
 0x187   : > { %1678 = vmatprep.subr.bf16.mxu1 %v1895_v3 }
 0x188   : > { %1255 = vmatprep.mubr.bf16.mxu1 %v1079_v7 }
 0x189   : > { %1256 = vmatmul.mubr.bf16.gmra.mrb[12].mxu1 %v1078_v6 }
 0x18a   : > { %1679 = vmatpush3.bf16.msra.mxu1 %v1895_v3 }
 0x18b   : > { %1680 = vmatprep.subr.bf16.mxu1 %v1896_v8 }
 0x18e   : > { %1681 = vmatpush3.bf16.msra.mxu1 %v1896_v8 }
 0x18f   : > { %1682 = vmatprep.subr.bf16.mxu1 %v1897_v9 }
 0x192   : > { %1683 = vmatpush3.bf16.msra.mxu1 %v1897_v9 }
 0x193   : > { %1684 = vmatprep.subr.bf16.mxu1 %v1898_v10 }
 0x196   : > { %1685 = vmatpush3.bf16.msra.mxu1 %v1898_v10 }
 0x197   : > { %1686 = vmatprep.subr.bf16.mxu1 %v1899_v11 }
 0x19a   : > { %1687 = vmatpush3.bf16.msra.mxu1 %v1899_v11 }
 0x19b   : > { %1688 = vmatprep.subr.bf16.mxu1 %v1900_v12 }
 0x19e   : > { %1689 = vmatpush3.bf16.msra.mxu1 %v1900_v12 }
 0x254   : > { %v1652_v13 = vpop.f32.mrb[8].mxu1 }
 0x255   : > { %v1653_v15 = vpop.f32.mrb[9].mxu1 }
 0x256   : > { %v1654_v16 = vadd.f32 %v1653_v15, %v1652_v13  ;;  %v1655_v17 = vpop.f32.mrb[10].mxu1 }
 0x257   : > { %v1656_v18 = vpop.f32.mrb[11].mxu1 }
 0x258   : > { %v1250_v19 = vadd.f32 %v1654_v16, %v1608_v14  ;;  %v1657_v20 = vadd.f32 %v1656_v18, %v1655_v17 }
 0x25a   : > { %v1253_v21 = vadd.f32 %v1657_v20, %v1608_v14  ;;  %v1264_v22 = vmax.f32 %v1250_v19, 0.0 }
 0x25c   : > { %v1265_v23 = vmax.f32 %v1253_v21, 0.0  ;;  %v1658_v24 = vpop.f32.mrb[12].mxu1 }
 0x25d   : > { %v1659_v25 = vpop.f32.mrb[13].mxu1 }
 0x25e   : > { %v1660_v26 = vadd.f32 %v1659_v25, %v1658_v24  ;;  %v1661_v27 = vpop.f32.mrb[14].mxu1  ;;  %v1268_v28 = vpack.c.bf16 %v1265_v23, %v1264_v22 }
 0x25f   : > { %v1662_v29 = vpop.f32.mrb[15].mxu1 }
 0x260   : > { %v1258_v30 = vadd.f32 %v1660_v26, %v1608_v14  ;;  %v1663_v31 = vadd.f32 %v1662_v29, %v1661_v27  ;;  %1690 = vmatprep.mubr.bf16.mxu1 %v1268_v28 }
 0x262   : > { %v1261_v32 = vadd.f32 %v1663_v31, %v1608_v14  ;;  %v1266_v33 = vmax.f32 %v1258_v30, 0.0 }
 0x264   : > { %v1267_v34 = vmax.f32 %v1261_v32, 0.0 }
 0x266   : > { %v1269_v35 = vpack.c.bf16 %v1267_v34, %v1266_v33 }
 0x268   : > { %1691 = vmatmul.mubr.bf16.vlgmr.msra.gmra.mrb[16].mxu1 %v1269_v35 }
 0x33b   : > { %v1692_v37 = vpop.f32.mrb[16].mxu1 }
 0x33c   : > { %v1384_v38 = vadd.f32 %v1692_v37, %v1625_v36  ;;  %v1375_v39 = vpop.f32.mrb[17].mxu1 }
 0x33d   : > { %v1376_v40 = vadd.f32 %v1625_v36, %v1375_v39  ;;  %v1693_v41 = vpop.f32.mrb[18].mxu1 }
 0x33e   : > { %1394 = vmax.xlane.f32.xlu1 %v1384_v38  ;;  %v1378_v42 = vpop.f32.mrb[19].mxu1  ;;  %v1387_v43 = vadd.f32 %v1693_v41, %v1625_v36 }
 0x33f   : > { %1390 = vmax.xlane.f32.xlu0 %v1376_v40  ;;  %v1379_v44 = vadd.f32 %v1625_v36, %v1378_v42 }
 0x342   : > { %1396 = vmax.xlane.f32.xlu1 %v1387_v43 }
 0x343   : > { %1392 = vmax.xlane.f32.xlu0 %v1379_v44 }
 0x3cb   : > { %v1395_v45 = vpop.xlane.xlu1 %1394 }
 0x3cc   : > { %v1400_v46 = vsub.f32 %v1384_v38, %v1395_v45  ;;  %v1391_v47 = vpop.xlane.xlu0 %1390 }
 0x3cd   : > { %v1398_v48 = vsub.f32 %v1376_v40, %v1391_v47 }
 0x3ce   : > { %v1406_v51 = vmul.f32 1.442695, %v1400_v46 }
 0x3cf   : > { %v1402_v49 = vmul.f32 1.442695, %v1398_v48  ;;  %v1397_v50 = vpop.xlane.xlu1 %1396 }
 0x3d0   : > { %v1393_v52 = vpop.xlane.xlu0 %1392  ;;  %v1401_v53 = vsub.f32 %v1387_v43, %v1397_v50 }
 0x3d1   : > { %1901 = vpow2.f32 %v1402_v49  ;;  %v1399_v54 = vsub.f32 %v1379_v44, %v1393_v52 }
 0x3d2   : > { %1903 = vpow2.f32 %v1406_v51  ;;  %v1408_v56 = vmul.f32 1.442695, %v1401_v53 }
 0x3d3   : > { %v1404_v55 = vmul.f32 1.442695, %v1399_v54 }
 0x3d5   : > { %1905 = vpow2.f32 %v1404_v55 }
 0x3d6   : > { %1907 = vpow2.f32 %v1408_v56 }
 0x3db   : > { %v1902_v57 = vpop.eup %1901 }
 0x3dc   : > { %1410 = vadd.xlane.f32.xlu0 %v1902_v57  ;;  %v1904_v58 = vpop.eup %1903 }
 0x3df   : > { %v1906_v59 = vpop.eup %1905 }
 0x3e0   : > { %1414 = vadd.xlane.f32.xlu0 %v1904_v58  ;;  %1412 = vadd.xlane.f32.xlu1 %v1906_v59  ;;  %v1908_v60 = vpop.eup %1907 }
 0x3e4   : > { %1416 = vadd.xlane.f32.xlu1 %v1908_v60 }
 0x469   : > { %v1411_v61 = vpop.xlane.xlu0 %1410 }
 0x46a   : > { %1909 = vlog2.f32 %v1411_v61 }
 0x46d   : > { %v1413_v62 = vpop.xlane.xlu1 %1412  ;;  %v1415_v63 = vpop.xlane.xlu0 %1414 }
 0x46e   : > { %1911 = vlog2.f32 %v1413_v62 }
 0x46f   : > { %1913 = vlog2.f32 %v1415_v63 }
 0x471   : > { %v1417_v0 = vpop.xlane.xlu1 %1416 }
 0x472   : > { %1915 = vlog2.f32 %v1417_v0 }
 0x474   : > { %v1910_v1 = vpop.eup %1909 }
 0x475   : > { %v1419_v2 = vmul.f32 0.6931472, %v1910_v1 }
 0x477   : > { %v1426_v3 = vsub.f32 %v1398_v48, %v1419_v2 }
 0x478   : > { %v1912_v4 = vpop.eup %1911 }
 0x479   : > { %v1914_v5 = vpop.eup %1913  ;;  %1430 = vst [vmem:[%s298_s18] sm:$0xff] %v1426_v3  ;;  %v1421_v6 = vmul.f32 0.6931472, %v1912_v4 }
 0x47a   : > { %v1423_v7 = vmul.f32 0.6931472, %v1914_v5 }
 0x47b   : > { %v1427_v8 = vsub.f32 %v1399_v54, %v1421_v6 }
 0x47c   : > { %v1916_v9 = vpop.eup %1915  ;;  %v1428_v10 = vsub.f32 %v1400_v46, %v1423_v7 }
 0x47d   : > { %1431 = vst [vmem:[%s298_s18 + $0x8] sm:$0xff] %v1427_v8  ;;  %v1425_v11 = vmul.f32 0.6931472, %v1916_v9 }
 0x47e   : > { %1432 = vst [vmem:[%s298_s18 + $0x10] sm:$0xff] %v1428_v10 }
 0x47f   : > { %v1429_v12 = vsub.f32 %v1401_v53, %v1425_v11 }
 0x481   : > { %1433 = vst [vmem:[%s298_s18 + $0x18] sm:$0xff] %v1429_v12 }
 0x482 PF: > { %s18_s24 = sadd.s32 1, %s1955_s24  }
 0x483   : > { %p15_p3 = scmp.ge.s32.totalorder %s18_s24, 4  }
 0x485   :  { %17 = sbr.rel (!%p15_p3) target bundleno = 1 (0x1), region = 83 }
 0x48c   :  { %1456 = vsyncpa [#allocation3], 1 }
 0x48d   :  { %1458 = vsyncpa [#allocation3 + $0x1], 1 }

</bundles_post_ra>
